<compile_context>
chip_gen: v6e
topology: v6e:2x2x1
jax: 0.10.0
libtpu: 0.0.40
codegen_flags: <defaults>
</compile_context>

<pallas_src>
import numpy as np
import jax
import jax.numpy as jnp
from jax.experimental import pallas as pl
from jax.experimental.pallas import tpu as pltpu


def _make_box_kernel(tn, tiled):
    def kernel(a_ref, bt_ref, x_ref, o_ref):
        x = x_ref[0]                                      # (Q*H, L_pad) f32 slab
        # merged column box-mean (block-diag Bt over the P packed slices): one matmul
        y = jnp.dot(x, bt_ref[...], preferred_element_type=jnp.float32)
        # merged row box-mean (block-diag A over the Q stacked slices): one matmul
        mean = jnp.dot(a_ref[...], y, preferred_element_type=jnp.float32)
        if tiled:
            c0 = pl.multiple_of(pl.program_id(1) * tn, 128)
            xc = x_ref[0, :, pl.ds(c0, tn)]               # lanes of this output panel
        else:
            xc = x
        o_ref[0] = (xc - mean).astype(o_ref.dtype)
    return kernel


def _window_pad(size):
    padding_check = (size - 1) / 2
    if padding_check.is_integer():
        return int(padding_check)             # odd size
    return int(padding_check) + 1             # even size (module crops [:-1, :-1])


def _scaled_window_matrices(H, W, size, pad):
    # A_s[i, r] = [i-pad <= r <= i-pad+size-1] / rowcount(i), rows clipped to [0, H)
    i = np.arange(H)[:, None]
    r = np.arange(H)[None, :]
    A = ((r >= i - pad) & (r <= i - pad + size - 1)).astype(np.float32)
    A /= A.sum(axis=1, keepdims=True)               # rowcount >= 1 (window contains i)
    # Bt_s[c, j] = [j-pad <= c <= j-pad+size-1] / colcount(j)
    c = np.arange(W)[:, None]
    j = np.arange(W)[None, :]
    Bt = ((c >= j - pad) & (c <= j - pad + size - 1)).astype(np.float32)
    Bt /= Bt.sum(axis=0, keepdims=True)             # colcount >= 1
    return A, Bt


def box_filter_by_slice(x, size=30):
    """x: (N, C, H, W) float -> x - slicewise clipped box mean (== torch module forward)."""
    N, C, H, W = x.shape
    pad = _window_pad(size)
    A, Bt = _scaled_window_matrices(H, W, size, pad)

    S = N * C
    # lane packing factor: P slices side-by-side along the last (lane) dim
    P = max(1, min(128 // W, S)) if W < 128 else 1
    L = P * W
    n_groups = -(-S // P)

    # ---- lane (output-column) tiling: keep Bt panels / output panels VMEM-friendly ----
    if L <= 1024:
        TN, L_pad, n_col = L, L, 1
    else:
        TN = 512
        L_pad = -(-L // TN) * TN
        n_col = L_pad // TN

    def vmem_bytes(q, tn, a_bufs, bt_bufs, x_bufs):
        qh = q * H
        return 4 * (a_bufs * qh * qh + bt_bufs * L_pad * tn
                    + x_bufs * qh * L_pad + 2 * qh * tn)

    # ---- sublane batching: stack Q lane-groups per grid step; cap Q*H at 256 so the
    # block-diagonal row matmul stays one MXU contraction pass; back off on VMEM.
    Q = max(1, min(n_groups, 256 // max(H, 1)))
    while Q > 1 and vmem_bytes(Q, TN, 2, 2, 2) > (40 << 20):
        Q -= 1
    QH = Q * H
    G = -(-n_groups // Q)                           # slice-group grid extent
    S_pad = G * Q * P

    # narrower lane tile if the conservative estimate is still too big
    if n_col > 1 and vmem_bytes(Q, TN, 1, 2, 2) > (48 << 20):
        TN = 256
        L_pad = -(-L // TN) * TN
        n_col = L_pad // TN

    # ---- host-side packing into lane-dense (QH, L_pad) slabs ----
    xf = x.astype(jnp.float32).reshape(S, H, W)
    if S_pad != S:                                  # zero-pad to whole blocks (discarded later)
        xf = jnp.pad(xf, ((0, S_pad - S), (0, 0), (0, 0)))
    # (G, Q, P, H, W) -> (G, Q, H, P, W) -> (G, Q*H, P*W): lane-dense slabs
    xs = xf.reshape(G, Q, P, H, W).transpose(0, 1, 3, 2, 4).reshape(G, QH, L)
    if L_pad != L:
        xs = jnp.pad(xs, ((0, 0), (0, 0), (0, L_pad - L)))

    A_big = np.kron(np.eye(Q, dtype=np.float32), A) if Q > 1 else A
    Bt_big = np.kron(np.eye(P, dtype=np.float32), Bt) if P > 1 else Bt
    if L_pad != L:                                  # only possible when P == 1
        Bt_big = np.pad(Bt_big, ((0, L_pad - L), (0, L_pad - L)))
    A_big = jnp.asarray(A_big)
    Bt_big = jnp.asarray(Bt_big)

    # Grid-invariant operands: single-buffer once large (constant index_map, so
    # double-buffering only wastes VMEM).
    a_kwargs = {"pipeline_mode": pl.Buffered(1)} if 4 * QH * QH > (4 << 20) else {}
    bt_kwargs = ({"pipeline_mode": pl.Buffered(1)}
                 if n_col == 1 and 4 * L_pad * TN > (4 << 20) else {})
    a_bufs = 1 if a_kwargs else 2
    bt_bufs = 1 if bt_kwargs else 2
    # x slab is reused across all column tiles of a group; drop to single-buffering
    # only if the double-buffered plan would not fit (one exposed slab DMA per group).
    x_kwargs, x_bufs = {}, 2
    if vmem_bytes(Q, TN, a_bufs, bt_bufs, 2) > (48 << 20):
        x_kwargs, x_bufs = {"pipeline_mode": pl.Buffered(1)}, 1

    vmem_need = vmem_bytes(Q, TN, a_bufs, bt_bufs, x_bufs)
    compiler_kwargs = {"dimension_semantics": ("parallel", "parallel")}
    if vmem_need > (16 << 20):                      # raise scoped VMEM (v5e default: 16 MiB)
        compiler_kwargs["vmem_limit_bytes"] = int(min(64 << 20, int(vmem_need * 1.5)))

    flops = G * 2 * (QH * L_pad * L_pad + QH * QH * L_pad)
    bytes_accessed = 4 * (2 * G * QH * L_pad + QH * QH + L_pad * L_pad)

    kernel = _make_box_kernel(TN, n_col > 1)
    out = pl.pallas_call(
        kernel,
        out_shape=jax.ShapeDtypeStruct((G, QH, L_pad), jnp.float32),
        grid_spec=pl.GridSpec(
            grid=(G, n_col),                        # inner axis = lane tiles (x reused)
            in_specs=[
                pl.BlockSpec((QH, QH), lambda g, j: (0, 0), **a_kwargs),       # A_big
                pl.BlockSpec((L_pad, TN), lambda g, j: (0, j), **bt_kwargs),   # Bt panel
                pl.BlockSpec((1, QH, L_pad), lambda g, j: (g, 0, 0), **x_kwargs),  # slab
            ],
            out_specs=pl.BlockSpec((1, QH, TN), lambda g, j: (g, 0, j)),
        ),
        compiler_params=pltpu.CompilerParams(**compiler_kwargs),
        cost_estimate=pl.CostEstimate(
            flops=flops, transcendentals=0, bytes_accessed=bytes_accessed
        ),
    )(A_big, Bt_big, xs)

    # unpack back to (N, C, H, W)
    if L_pad != L:
        out = out[:, :, :L]
    out = out.reshape(G, Q, H, P, W).transpose(0, 1, 3, 2, 4).reshape(S_pad, H, W)
    return out[:S].reshape(N, C, H, W).astype(x.dtype)


def _reference_numpy(x_np, size=30):
    # independent reference of AvgPool2d(size, stride=1, padding, count_include_pad=False)
    # followed by the [:-1, :-1] crop (even size) and the x - norm subtraction.
    N, C, H, W = x_np.shape
    pad = _window_pad(size)
    out = np.empty_like(x_np)
    for n in range(N):
        for ch in range(C):
            for i in range(H):
                r0 = max(0, i - pad)
                r1 = min(H, i - pad + size)
                for j in range(W):
                    c0 = max(0, j - pad)
                    c1 = min(W, j - pad + size)
                    win = x_np[n, ch, r0:r1, c0:c1]
                    out[n, ch, i, j] = x_np[n, ch, i, j] - win.mean()
    return out


if __name__ == "__main__":
    key = jax.random.PRNGKey(0)
    x = jax.random.normal(key, (2, 4, 16, 16), dtype=jnp.float32)

    y = box_filter_by_slice(x, size=30)
    y = jax.block_until_ready(y)

    ref = _reference_numpy(np.asarray(x), size=30)
    np.testing.assert_allclose(np.asarray(y), ref, rtol=1e-5, atol=1e-5)

    print("KERNEL_OK")
</pallas_src>

<mosaic_0001>
module attributes {stable_mosaic.version = 11 : i64} {
  func.func @kernel(%arg0: i32, %arg1: i32, %arg2: memref<16x16xf32, #tpu.memory_space<vmem>>, %arg3: memref<128x128xf32, #tpu.memory_space<vmem>>, %arg4: memref<1x16x128xf32, #tpu.memory_space<vmem>>, %arg5: memref<1x16x128xf32, #tpu.memory_space<vmem>>) attributes {dimension_semantics = [#tpu.dimension_semantics<parallel>, #tpu.dimension_semantics<parallel>], iteration_bounds = array<i64: 1, 1>, scalar_prefetch = 0 : i64, scratch_operands = 0 : i64, tpu.core_type = #tpu.core_type<tc>, window_params = [{pipeline_mode = #tpu.pipeline_mode<synchronous>, transform_indices = @transform_0, window_bounds = array<i64: 16, 16>}, {transform_indices = @transform_1, window_bounds = array<i64: 128, 128>}, {transform_indices = @transform_2, window_bounds = array<i64: 1, 16, 128>}, {transform_indices = @transform_3, window_bounds = array<i64: 1, 16, 128>}]} {
    %c0 = arith.constant 0 : index
    %c0_0 = arith.constant 0 : index
    %c0_1 = arith.constant 0 : index
    %0 = vector.load %arg4[%c0, %c0_0, %c0_1] : memref<1x16x128xf32, #tpu.memory_space<vmem>>, vector<1x16x128xf32>
    %1 = vector.shape_cast %0 : vector<1x16x128xf32> to vector<16x128xf32>
    %c0_2 = arith.constant 0 : index
    %c0_3 = arith.constant 0 : index
    %2 = vector.load %arg3[%c0_2, %c0_3] : memref<128x128xf32, #tpu.memory_space<vmem>>, vector<128x128xf32>
    %cst = arith.constant dense<0.000000e+00> : vector<16x128xf32>
    %3 = tpu.matmul %1, %2, %cst {dimension_numbers = #tpu.dot_dimension_numbers<[1], [0], [0], [1], [0, 0, 1, 1], [], []>} : vector<16x128xf32>, vector<128x128xf32>, vector<16x128xf32> -> vector<16x128xf32>
    %c0_4 = arith.constant 0 : index
    %c0_5 = arith.constant 0 : index
    %4 = vector.load %arg2[%c0_4, %c0_5] : memref<16x16xf32, #tpu.memory_space<vmem>>, vector<16x16xf32>
    %cst_6 = arith.constant dense<0.000000e+00> : vector<16x128xf32>
    %5 = tpu.matmul %4, %3, %cst_6 {dimension_numbers = #tpu.dot_dimension_numbers<[1], [0], [0], [1], [0, 0, 1, 1], [], []>} : vector<16x16xf32>, vector<16x128xf32>, vector<16x128xf32> -> vector<16x128xf32>
    %6 = arith.subf %1, %5 : vector<16x128xf32>
    %c0_7 = arith.constant 0 : index
    %c0_8 = arith.constant 0 : index
    %c0_9 = arith.constant 0 : index
    %7 = vector.load %arg5[%c0_7, %c0_8, %c0_9] : memref<1x16x128xf32, #tpu.memory_space<vmem>>, vector<1x16x128xf32>
    %8 = vector.shape_cast %7 : vector<1x16x128xf32> to vector<16x128xf32>
    %9 = vector.shape_cast %6 : vector<16x128xf32> to vector<1x16x128xf32>
    tpu.vector_store %arg5[%c0_7, %c0_8, %c0_9], %9 {strides = array<i32>} : memref<1x16x128xf32, #tpu.memory_space<vmem>>, vector<1x16x128xf32>,
    return
  }
  func.func @transform_0(%arg0: i32, %arg1: i32) -> (i32, i32) {
    %c0_i32 = arith.constant 0 : i32
    %c0_i32_0 = arith.constant 0 : i32
    %c0_i32_1 = arith.constant 0 : i32
    return %c0_i32, %c0_i32_0 : i32, i32
  }
  func.func @transform_1(%arg0: i32, %arg1: i32) -> (i32, i32) {
    %c0_i32 = arith.constant 0 : i32
    %c0_i32_0 = arith.constant 0 : i32
    return %c0_i32, %arg1 : i32, i32
  }
  func.func @transform_2(%arg0: i32, %arg1: i32) -> (i32, i32, i32) {
    %c0_i32 = arith.constant 0 : i32
    %c0_i32_0 = arith.constant 0 : i32
    %c0_i32_1 = arith.constant 0 : i32
    return %arg0, %c0_i32, %c0_i32_0 : i32, i32, i32
  }
  func.func @transform_3(%arg0: i32, %arg1: i32) -> (i32, i32, i32) {
    %c0_i32 = arith.constant 0 : i32
    %c0_i32_0 = arith.constant 0 : i32
    return %arg0, %c0_i32, %arg1 : i32, i32, i32
  }
}

</mosaic_0001>

<bundles_post_ra>
// kernel: tpu_custom_call.1
= control target key start
LH: loop header
LB: loop body
LE: loop exit
PB: predicated region body
PF: predicated region fallthrough
CT: control target
= control target key end

     0   :  { %8 = vsyncpa [#allocation3], 0  ;;  %s463_s0 = inlined_call_operand.hbm [shape: f32[16,16], index: 0, kind: input, shape index: {}]   ;;  %s464_s1 = inlined_call_operand.hbm [shape: f32[128,128], index: 1, kind: input, shape index: {}]   ;;  %s465_s2 = inlined_call_operand.hbm [shape: f32[1,16,128], index: 2, kind: input, shape index: {}]   ;;  %s466_s3 = inlined_call_operand.hbm [shape: f32[1,16,128], index: 3, kind: output, shape index: {}]  }
   0x1   :  { %9 = vsyncpa [#allocation6], 0 }
   0x2   :  { %10 = vsyncpa [#allocation4], 0  ;;  %s413_s12 = smov [#allocation5]   ;;  %s414_s14 = smov [#allocation2]  }
   0x3   :  { %s28_s13 = sshll.u32 %s413_s12, 4  ;;  %s16_s15 = sshll.u32 %s414_s14, 4  ;;  %s29_s13 = int_to_ptr.vmem [resolvable:$true] %s28_s13  ;;  %s17_s15 = int_to_ptr.vmem [resolvable:$true] %s16_s15 }
   0x4   :  { %s335_s16 = scalar_lea.vmem %s29_s13, 2048  ;;  %p340_p1 = scmp.lt.s32.totalorder %s29_s13, %s29_s13 }
   0x5   :  { %p336_p0 = scmp.ne.s32.totalorder %s29_s13, %s335_s16  ;;  %p341_p2 = scmp.lt.s32.totalorder %s335_s16, %s335_s16 }
   0x7   :  { %p342_p3 = por %p341_p2, %p340_p1 }
   0x9   :  { %p343_p4 = pnand %p342_p3, %p336_p0 }
   0xb   :  { %346 = shalt.err (!%p343_p4)
}
   0xc   :  { %s415_s17 = smov 128   ;;  %s416_s18 = smov 8  }
   0xd   :  { %34 = dma.hbm_to_vmem [thread:$0]  %s464_s1, 2048, %s29_s13, [#allocation6], %s415_s17, %s415_s17, %s416_s18  }
   0xe   :  { %s355_s21 = scalar_lea.vmem %s17_s15, 256  ;;  %p360_p6 = scmp.lt.s32.totalorder %s17_s15, %s17_s15 }
   0xf   :  { %p356_p5 = scmp.ne.s32.totalorder %s17_s15, %s355_s21  ;;  %p361_p7 = scmp.lt.s32.totalorder %s355_s21, %s355_s21 }
  0x11   :  { %p362_p8 = por %p361_p7, %p360_p6 }
  0x13   :  { %p363_p9 = pnand %p362_p8, %p356_p5 }
  0x15   :  { %366 = shalt.err (!%p363_p9)
}
  0x16   :  { %22 = dma.hbm_to_vmem [thread:$0]  %s463_s0, 256, %s17_s15, [#allocation3], %s415_s17, %s415_s17, %s416_s18  }
  0x17   :  { %s417_s24 = smov [#allocation7]  }
  0x18   :  { %s40_s25 = sshll.u32 %s417_s24, 4  ;;  %s41_s25 = int_to_ptr.vmem [resolvable:$true] %s40_s25 }
  0x19   :  { %s375_s26 = scalar_lea.vmem %s41_s25, 256  ;;  %p380_p11 = scmp.lt.s32.totalorder %s41_s25, %s41_s25 }
  0x1a   :  { %p376_p10 = scmp.ne.s32.totalorder %s41_s25, %s375_s26  ;;  %p381_p12 = scmp.lt.s32.totalorder %s375_s26, %s375_s26 }
  0x1c   :  { %p382_p13 = por %p381_p12, %p380_p11 }
  0x1e   :  { %p383_p0 = pnand %p382_p13, %p376_p10 }
  0x20   :  { %386 = shalt.err (!%p383_p0)
}
  0x21   :  { %46 = dma.hbm_to_vmem [thread:$0]  %s465_s2, 256, %s41_s25, [#allocation6], %s415_s17, %s415_s17, %s416_s18  }
  0x22   :  { %407 = dma.done.wait [#allocation3], 256  }
  0x23   :  { %408 = vsyncadd [#allocation3], 4294967040 }
  0x24   :  { %409 = dma.done.wait [#allocation6], 2304  }
  0x25   :  { %410 = vsyncadd [#allocation6], 4294964992  ;;  %v73_v0 = vld [vmem:[#allocation5 + $0x78] sm:$0xff]  ;;  %v72_v1 = vld [vmem:[#allocation5 + $0x70] sm:$0xff]  ;;  %vm151_vm0 = vcmask 130048   ;;  %s418_s0 = smov [#allocation8]  }
  0x26   :  { %279 = vmatprep.subr.mxu0 %v73_v0  ;;  %v71_v2 = vld [vmem:[#allocation5 + $0x68] sm:$0xff]  ;;  %v70_v3 = vld [vmem:[#allocation5 + $0x60] sm:$0xff]  ;;  %v69_v5 = vld [vmem:[#allocation5 + $0x58] sm:$0xff]  ;;  %s242_s2 = sshll.u32 %s418_s0, 4  ;;  %s243_s2 = int_to_ptr.vmem [resolvable:$true] %s242_s2 }
  0x27   :  { %280 = vmatpush3.msra.mxu0 %v73_v0  ;;  %v56_v4 = vld [vmem:[#allocation7] sm:$0xff]  ;;  %v68_v6 = vld [vmem:[#allocation5 + $0x50] sm:$0xff]  ;;  %v67_v7 = vld [vmem:[#allocation5 + $0x48] sm:$0xff]  ;;  %s387_s28 = scalar_lea.vmem %s243_s2, 256  ;;  %p392_p2 = scmp.lt.s32.totalorder %s243_s2, %s243_s2 }
  0x28   :  { %281 = vmatprep.subr.mxu0 %v72_v1  ;;  %311 = vmatprep.mubr.f32.mxu0 %v56_v4  ;;  %v66_v8 = vld [vmem:[#allocation5 + $0x40] sm:$0xff]  ;;  %v65_v9 = vld [vmem:[#allocation5 + $0x38] sm:$0xff]  ;;  %v64_v10 = vld [vmem:[#allocation5 + $0x30] sm:$0xff]  ;;  %p388_p1 = scmp.ne.s32.totalorder %s243_s2, %s387_s28  ;;  %p393_p3 = scmp.lt.s32.totalorder %s387_s28, %s387_s28 }
  0x29   :  { %282 = vmatpush3.msra.mxu0 %v72_v1  ;;  %v63_v11 = vld [vmem:[#allocation5 + $0x28] sm:$0xff]  ;;  %v62_v12 = vld [vmem:[#allocation5 + $0x20] sm:$0xff]  ;;  %v61_v13 = vld [vmem:[#allocation5 + $0x18] sm:$0xff] }
  0x2a   :  { %283 = vmatprep.subr.mxu0 %v71_v2  ;;  %v60_v14 = vld [vmem:[#allocation5 + $0x10] sm:$0xff]  ;;  %v59_v15 = vld [vmem:[#allocation5 + $0x8] sm:$0xff]  ;;  %v58_v16 = vld [vmem:[#allocation5] sm:$0xff]  ;;  %p394_p4 = por %p393_p3, %p392_p2 }
  0x2b   :  { %284 = vmatpush3.msra.mxu0 %v71_v2  ;;  %v57_v17 = vld [vmem:[#allocation7 + $0x8] sm:$0xff]  ;;  %v149_v18 = vld [vmem:[#allocation2] sm:$0xff]  ;;  %v150_v21 = vld [vmem:[#allocation2 + $0x8] sm:$0xff] }
  0x2c   :  { %285 = vmatprep.subr.mxu0 %v70_v3  ;;  %318 = vmatprep.mubr.msk.f32.mxu1 %vm151_vm0, %v149_v18  ;;  %p395_p5 = pnand %p394_p4, %p388_p1 }
  0x2d   :  { %286 = vmatpush3.msra.mxu0 %v70_v3 }
  0x2e   :  { %287 = vmatprep.subr.mxu0 %v69_v5 }
  0x2f   :  { %288 = vmatpush3.msra.mxu0 %v69_v5 }
  0x30   :  { %289 = vmatprep.subr.mxu0 %v68_v6 }
  0x31   :  { %290 = vmatpush3.msra.mxu0 %v68_v6 }
  0x32   :  { %291 = vmatprep.subr.mxu0 %v67_v7 }
  0x33   :  { %292 = vmatpush3.msra.mxu0 %v67_v7 }
  0x34   :  { %293 = vmatprep.subr.mxu0 %v66_v8 }
  0x35   :  { %294 = vmatpush3.msra.mxu0 %v66_v8 }
  0x36   :  { %295 = vmatprep.subr.mxu0 %v65_v9 }
  0x37   :  { %296 = vmatpush3.msra.mxu0 %v65_v9 }
  0x38   :  { %297 = vmatprep.subr.mxu0 %v64_v10 }
  0x39   :  { %298 = vmatpush3.msra.mxu0 %v64_v10 }
  0x3a   :  { %299 = vmatprep.subr.mxu0 %v63_v11 }
  0x3b   :  { %300 = vmatpush3.msra.mxu0 %v63_v11 }
  0x3c   :  { %301 = vmatprep.subr.mxu0 %v62_v12 }
  0x3d   :  { %302 = vmatpush3.msra.mxu0 %v62_v12 }
  0x3e   :  { %303 = vmatprep.subr.mxu0 %v61_v13 }
  0x3f   :  { %304 = vmatpush3.msra.mxu0 %v61_v13 }
  0x40   :  { %305 = vmatprep.subr.mxu0 %v60_v14 }
  0x41   :  { %306 = vmatpush3.msra.mxu0 %v60_v14 }
  0x42   :  { %307 = vmatprep.subr.mxu0 %v59_v15 }
  0x43   :  { %308 = vmatpush3.msra.mxu0 %v59_v15 }
  0x44   :  { %309 = vmatprep.subr.mxu0 %v58_v16 }
  0x45   :  { %310 = vmatpush3.msra.mxu0 %v58_v16 }
  0x46   :  { %312 = vmatmul.mubr.f32.vlgmr.msra.gmra.mxu0 %v57_v17 }
 0x106   :  { %v313_v19 = vpop.f32.mrf.mxu0 }
 0x107   :  { %314 = vmatprep.subr.mxu1 %v313_v19 }
 0x108   :  { %v140_v20 = vpop.f32.mrf.mxu0  ;;  %315 = vmatpush3.msra.mxu1 %v313_v19 }
 0x109   :  { %316 = vmatprep.subr.mxu1 %v140_v20 }
 0x10a   :  { %317 = vmatpush3.msra.mxu1 %v140_v20 }
 0x10b   :  { %319 = vmatmul.mubr.msk.f32.vlgmr.msra.gmra.mxu1 %vm151_vm0, %v150_v21 }
 0x1cb   :  { %v320_v22 = vpop.f32.mrf.mxu1 }
 0x1cc   :  { %v234_v23 = vsub.f32 %v57_v17, %v320_v22 }
 0x1cd   :  { %v224_v24 = vpop.f32.mrf.mxu1 }
 0x1ce   :  { %236 = vst [vmem:[#allocation8 + $0x8] sm:$0xff] %v234_v23  ;;  %v233_v25 = vsub.f32 %v56_v4, %v224_v24 }
 0x1d0   :  { %235 = vst [vmem:[#allocation8] sm:$0xff] %v233_v25 }
 0x1d1   :  { %398 = shalt.err (!%p395_p5)
}
 0x1d2   :  { %248 = dma.vmem_to_hbm [thread:$0]  %s243_s2, 256, %s466_s3, [#allocation4], %s415_s17, %s415_s17, %s416_s18  }
 0x1d3   :  { %411 = dma.done.wait [#allocation4], 256  }
 0x1d4   :  { %412 = vsyncadd [#allocation4], 4294967040 }
 0x1d5   :  { %252 = vsyncpa [#allocation3], 1 }
 0x1d6   :  { %253 = vsyncpa [#allocation6], 1 }
 0x1d7   :  { %254 = vsyncpa [#allocation4], 1 }

</bundles_post_ra>
